<compile_context>
chip_gen: v5e
topology: v5e:2x2
jax: 0.10.0
libtpu: 0.0.40
codegen_flags: <defaults>
</compile_context>

<pallas_src>
import functools

import jax
import jax.numpy as jnp
from jax.experimental import pallas as pl
from jax.experimental.pallas import tpu as pltpu

LANE = 128
MIB = 1024 * 1024


def _round_up(x, m):
    return ((x + m - 1) // m) * m


def _device_vmem_bytes():
    """Physical VMEM per TensorCore (fallback: 128 MiB, v5e/v6e)."""
    try:
        info = pltpu.get_tpu_info()
        cap = getattr(info, "vmem_capacity_bytes", None)
        if cap:
            return int(cap)
    except Exception:
        pass
    return 128 * MIB


def _footprint_bytes(tm, tk, dh_pad, dout_pad):
    """Approximate VMEM working set for one aggregation layer."""
    a = 2 * tm * tk * 2                       # A bf16, double-buffered
    z = 2 * tk * dh_pad * 2                   # projected feats bf16, double-buffered
    acc = tm * max(dh_pad, dout_pad) * 4      # f32 accumulator
    outs = 2 * 2 * tm * dout_pad * 4          # worst case: two f32 outputs, dbl-buffered
    resident = dh_pad * dout_pad * 2 + (dh_pad + dout_pad) * 4   # W2 + biases
    return a + z + acc + outs + resident


def _plan(n, dh_pad, dout_pad):
    """Return (n_pad, tile_m, tile_k, vmem_limit_bytes), generation-aware."""
    vmem_cap = _device_vmem_bytes()
    # v7x has 64 MiB / TC -> cap working set ~40 MiB; v5e/v6e (128 MiB) -> ~56 MiB.
    budget = 40 * MIB if vmem_cap <= 64 * MIB else 56 * MIB
    n_lane = _round_up(n, LANE)
    if n_lane <= 2048:
        # Single block per axis for small/medium graphs.
        return n_lane, n_lane, n_lane, budget
    for tm, tk in ((2048, 2048), (2048, 1024), (1024, 2048), (1024, 1024),
                   (512, 1024), (512, 512), (256, 512)):
        if _footprint_bytes(tm, tk, dh_pad, dout_pad) <= budget:
            n_pad = _round_up(n, max(tm, tk))      # tiles are powers of two
            return n_pad, tm, tk, budget
    return _round_up(n, 512), 256, 512, budget


# --------------------------------------------------------------------------
# Layer-1 kernel:  z2 = relu(A @ z1 + b1) @ W2   (fused inter-layer projection)
# --------------------------------------------------------------------------
def _layer1_kernel(a_ref, z_ref, b_ref, w2_ref, z2_ref, acc_ref):
    k = pl.program_id(1)

    @pl.when(k == 0)
    def _():
        acc_ref[...] = jnp.zeros_like(acc_ref)

    acc_ref[...] += jnp.dot(a_ref[...], z_ref[...],
                            preferred_element_type=jnp.float32)

    @pl.when(k == pl.num_programs(1) - 1)
    def _():
        h1 = jnp.maximum(acc_ref[...] + b_ref[...], 0.0)          # f32 bias + ReLU
        # Fused layer-2 projection (128-wide, runs only on the last k step).
        z2 = jnp.dot(h1.astype(jnp.bfloat16), w2_ref[...],
                     preferred_element_type=jnp.float32)
        z2_ref[...] = z2.astype(z2_ref.dtype)                     # bf16 writeback


# --------------------------------------------------------------------------
# Layer-2 kernel:  h2 = A @ z2 + b2, with fused masked log_softmax
# --------------------------------------------------------------------------
def _layer2_kernel(a_ref, z_ref, b_ref, h_ref, logp_ref, acc_ref, *, valid_cols):
    k = pl.program_id(1)

    @pl.when(k == 0)
    def _():
        acc_ref[...] = jnp.zeros_like(acc_ref)

    acc_ref[...] += jnp.dot(a_ref[...], z_ref[...],
                            preferred_element_type=jnp.float32)

    @pl.when(k == pl.num_programs(1) - 1)
    def _():
        h = acc_ref[...] + b_ref[...]
        h_ref[...] = h                                            # logits (lane-dense)
        # Masked log_softmax over the feature axis: padded lanes -> -inf.
        col = jax.lax.broadcasted_iota(jnp.int32, h.shape, 1)
        masked = jnp.where(col < valid_cols, h, -jnp.inf)
        m = jnp.max(masked, axis=1, keepdims=True)
        shifted = masked - m
        lse = jnp.log(jnp.sum(jnp.exp(shifted), axis=1, keepdims=True))
        logp_ref[...] = shifted - lse


# --------------------------------------------------------------------------
# pallas_call wrappers
# --------------------------------------------------------------------------
def _layer1_call(a_bf, z1_bf, b1_f32, w2_bf, *, tile_m, tile_k, vmem_limit):
    n_pad = a_bf.shape[0]
    dh_pad = z1_bf.shape[1]
    dout_pad = w2_bf.shape[1]
    grid = (n_pad // tile_m, n_pad // tile_k)

    cost = pl.CostEstimate(
        flops=2 * n_pad * n_pad * dh_pad + 2 * n_pad * dh_pad * dout_pad,
        transcendentals=0,
        bytes_accessed=(n_pad * n_pad * 2 + n_pad * dh_pad * 2
                        + n_pad * dout_pad * 2 + dh_pad * dout_pad * 2),
    )

    return pl.pallas_call(
        _layer1_kernel,
        out_shape=jax.ShapeDtypeStruct((n_pad, dout_pad), jnp.bfloat16),
        grid=grid,
        in_specs=[
            pl.BlockSpec((tile_m, tile_k), lambda i, k: (i, k)),     # A tile
            pl.BlockSpec((tile_k, dh_pad), lambda i, k: (k, 0)),     # z1 tile
            pl.BlockSpec((1, dh_pad), lambda i, k: (0, 0)),          # b1 (resident)
            pl.BlockSpec((dh_pad, dout_pad), lambda i, k: (0, 0)),   # W2 (resident)
        ],
        out_specs=pl.BlockSpec((tile_m, dout_pad), lambda i, k: (i, 0)),
        scratch_shapes=[pltpu.VMEM((tile_m, dh_pad), jnp.float32)],
        compiler_params=pltpu.CompilerParams(
            dimension_semantics=("parallel", "arbitrary"),
            vmem_limit_bytes=vmem_limit),
        cost_estimate=cost,
    )(a_bf, z1_bf, b1_f32, w2_bf)


def _layer2_call(a_bf, z2_bf, b2_f32, *, tile_m, tile_k, vmem_limit, valid_cols):
    n_pad = a_bf.shape[0]
    dout_pad = z2_bf.shape[1]
    grid = (n_pad // tile_m, n_pad // tile_k)

    cost = pl.CostEstimate(
        flops=2 * n_pad * n_pad * dout_pad,
        transcendentals=n_pad * dout_pad,
        bytes_accessed=(n_pad * n_pad * 2 + n_pad * dout_pad * 2
                        + 2 * n_pad * dout_pad * 4),
    )

    kernel = functools.partial(_layer2_kernel, valid_cols=valid_cols)
    out_block = pl.BlockSpec((tile_m, dout_pad), lambda i, k: (i, 0))

    return pl.pallas_call(
        kernel,
        out_shape=(jax.ShapeDtypeStruct((n_pad, dout_pad), jnp.float32),
                   jax.ShapeDtypeStruct((n_pad, dout_pad), jnp.float32)),
        grid=grid,
        in_specs=[
            pl.BlockSpec((tile_m, tile_k), lambda i, k: (i, k)),     # A tile
            pl.BlockSpec((tile_k, dout_pad), lambda i, k: (k, 0)),   # z2 tile
            pl.BlockSpec((1, dout_pad), lambda i, k: (0, 0)),        # b2 (resident)
        ],
        out_specs=(out_block, out_block),
        scratch_shapes=[pltpu.VMEM((tile_m, dout_pad), jnp.float32)],
        compiler_params=pltpu.CompilerParams(
            dimension_semantics=("parallel", "arbitrary"),
            vmem_limit_bytes=vmem_limit),
        cost_estimate=cost,
    )(a_bf, z2_bf, b2_f32)


# --------------------------------------------------------------------------
# Full 2-layer GCN forward (inference).  Dropout(p=0.5, training=False) == id.
# --------------------------------------------------------------------------
def gcn_forward(a_hat, x, w1, b1, w2, b2):
    n, dim_in = x.shape
    dim_h = w1.shape[1]
    dim_out = w2.shape[1]

    dh_pad = _round_up(dim_h, LANE)
    dout_pad = _round_up(dim_out, LANE)
    n_pad, tile_m, tile_k, vmem_limit = _plan(n, dh_pad, dout_pad)

    # Pad A directly into bf16 (no padded f32 N^2 intermediate).
    a_bf = jnp.zeros((n_pad, n_pad), jnp.bfloat16).at[:n, :n].set(
        a_hat.astype(jnp.bfloat16))

    x_p = jnp.zeros((n_pad, dim_in), jnp.float32).at[:n, :].set(x)
    w1_p = jnp.zeros((dim_in, dh_pad), jnp.float32).at[:, :dim_h].set(w1)
    b1_p = jnp.zeros((1, dh_pad), jnp.float32).at[:, :dim_h].set(
        b1.reshape(1, dim_h))
    w2_bf = jnp.zeros((dh_pad, dout_pad), jnp.bfloat16).at[:dim_h, :dim_out].set(
        w2.astype(jnp.bfloat16))
    b2_p = jnp.zeros((1, dout_pad), jnp.float32).at[:, :dim_out].set(
        b2.reshape(1, dim_out))

    # Layer-1 feature projection (K = dim_in is tiny) hoisted to XLA; bf16 for MXU.
    z1 = jnp.dot(x_p, w1_p, preferred_element_type=jnp.float32).astype(jnp.bfloat16)

    # Layer 1 (Pallas): z2 = relu(A @ z1 + b1) @ W2  -> single bf16 inter-layer tensor.
    z2 = _layer1_call(a_bf, z1, b1_p, w2_bf,
                      tile_m=tile_m, tile_k=tile_k, vmem_limit=vmem_limit)

    # Layer 2 (Pallas): h2 = A @ z2 + b2, fused masked log_softmax epilogue.
    h2, logp = _layer2_call(a_bf, z2, b2_p,
                            tile_m=tile_m, tile_k=tile_k, vmem_limit=vmem_limit,
                            valid_cols=dim_out)

    return h2[:n, :dim_out], logp[:n, :dim_out]


# --------------------------------------------------------------------------
# Host-side glue (plain JAX): adjacency normalization & parameter init
# --------------------------------------------------------------------------
def build_normalized_adjacency(edge_index, num_nodes):
    """Dense D^{-1/2} (A + I) D^{-1/2} from a (2, E) edge_index (src, dst)."""
    # TODO(synk): real (sparse) graphs should use block-sparse A via a
    # PrefetchScalarGridSpec index_map over nonzero column blocks instead of a
    # dense (N, N) matrix; duplicate edges are deduplicated here (PyG scatter-adds).
    src, dst = edge_index[0], edge_index[1]
    adj = jnp.zeros((num_nodes, num_nodes), jnp.float32)
    adj = adj.at[dst, src].set(1.0)                       # message: src -> dst
    adj = adj + jnp.eye(num_nodes, dtype=jnp.float32)     # self loops
    deg = jnp.sum(adj, axis=1)
    dinv_sqrt = jnp.where(deg > 0, 1.0 / jnp.sqrt(deg), 0.0)
    return dinv_sqrt[:, None] * adj * dinv_sqrt[None, :]


def glorot(key, shape):
    fan_in, fan_out = shape
    limit = jnp.sqrt(6.0 / (fan_in + fan_out))
    return jax.random.uniform(key, shape, jnp.float32, -limit, limit)


if __name__ == "__main__":
    # Small synthetic graph: N nodes, dim_in -> dim_h -> dim_out
    N, DIM_IN, DIM_H, DIM_OUT = 16, 8, 32, 4
    E = 40

    key = jax.random.PRNGKey(0)
    k_x, k_e1, k_e2, k_w1, k_w2 = jax.random.split(key, 5)

    x = jax.random.normal(k_x, (N, DIM_IN), jnp.float32)
    src = jax.random.randint(k_e1, (E,), 0, N)
    dst = jax.random.randint(k_e2, (E,), 0, N)
    edge_index = jnp.stack([src, dst], axis=0)            # (2, E)

    w1 = glorot(k_w1, (DIM_IN, DIM_H))
    b1 = jnp.zeros((1, DIM_H), jnp.float32)
    w2 = glorot(k_w2, (DIM_H, DIM_OUT))
    b2 = jnp.zeros((1, DIM_OUT), jnp.float32)

    a_hat = build_normalized_adjacency(edge_index, N)

    fwd = jax.jit(gcn_forward)
    h, logp = fwd(a_hat, x, w1, b1, w2, b2)
    jax.block_until_ready((h, logp))

    # Pure-JAX f32 reference (kernel uses bf16 MXU inputs -> loose tolerance).
    h1_ref = jnp.maximum(a_hat @ (x @ w1) + b1, 0.0)
    h2_ref = a_hat @ (h1_ref @ w2) + b2
    logp_ref = jax.nn.log_softmax(h2_ref, axis=1)

    assert h.shape == (N, DIM_OUT) and logp.shape == (N, DIM_OUT)
    assert jnp.allclose(h, h2_ref, atol=4e-2, rtol=2e-2), "logits mismatch"
    assert jnp.allclose(logp, logp_ref, atol=4e-2, rtol=2e-2), "log_softmax mismatch"

    print("KERNEL_OK")
</pallas_src>

<mosaic_0001>
module attributes {stable_mosaic.version = 11 : i64} {
  func.func @_layer1_kernel(%arg0: i32, %arg1: i32, %arg2: memref<128x128xbf16, #tpu.memory_space<vmem>>, %arg3: memref<128x128xbf16, #tpu.memory_space<vmem>>, %arg4: memref<1x128xf32, #tpu.memory_space<vmem>>, %arg5: memref<128x128xbf16, #tpu.memory_space<vmem>>, %arg6: memref<128x128xbf16, #tpu.memory_space<vmem>>, %arg7: memref<128x128xf32, #tpu.memory_space<vmem>>) attributes {dimension_semantics = [#tpu.dimension_semantics<parallel>, #tpu.dimension_semantics<arbitrary>], iteration_bounds = array<i64: 1, 1>, scalar_prefetch = 0 : i64, scratch_operands = 1 : i64, tpu.core_type = #tpu.core_type<tc>, window_params = [{transform_indices = @transform_0, window_bounds = array<i64: 128, 128>}, {transform_indices = @transform_1, window_bounds = array<i64: 128, 128>}, {pipeline_mode = #tpu.pipeline_mode<synchronous>, transform_indices = @transform_2, window_bounds = array<i64: 1, 128>}, {pipeline_mode = #tpu.pipeline_mode<synchronous>, transform_indices = @transform_3, window_bounds = array<i64: 128, 128>}, {transform_indices = @transform_4, window_bounds = array<i64: 128, 128>}]} {
    %c0_i32 = arith.constant 0 : i32
    %0 = arith.cmpi eq, %arg1, %c0_i32 : i32
    %1 = arith.extui %0 : i1 to i32
    %c0_i32_0 = arith.constant 0 : i32
    %2 = arith.cmpi ne, %1, %c0_i32_0 : i32
    scf.if %2 {
      %cst_10 = arith.constant 0.000000e+00 : f32
      %12 = vector.broadcast %cst_10 : f32 to vector<128x128xf32>
      %c0_11 = arith.constant 0 : index
      %c0_12 = arith.constant 0 : index
      %13 = vector.load %arg7[%c0_11, %c0_12] : memref<128x128xf32, #tpu.memory_space<vmem>>, vector<128x128xf32>
      tpu.vector_store %arg7[%c0_11, %c0_12], %12 {strides = array<i32>} : memref<128x128xf32, #tpu.memory_space<vmem>>, vector<128x128xf32>,
    } else {
    }
    %c0 = arith.constant 0 : index
    %c0_1 = arith.constant 0 : index
    %3 = vector.load %arg7[%c0, %c0_1] : memref<128x128xf32, #tpu.memory_space<vmem>>, vector<128x128xf32>
    %c0_2 = arith.constant 0 : index
    %c0_3 = arith.constant 0 : index
    %4 = vector.load %arg2[%c0_2, %c0_3] : memref<128x128xbf16, #tpu.memory_space<vmem>>, vector<128x128xbf16>
    %c0_4 = arith.constant 0 : index
    %c0_5 = arith.constant 0 : index
    %5 = vector.load %arg3[%c0_4, %c0_5] : memref<128x128xbf16, #tpu.memory_space<vmem>>, vector<128x128xbf16>
    %cst = arith.constant dense<0.000000e+00> : vector<128x128xf32>
    %6 = tpu.matmul %4, %5, %cst {dimension_numbers = #tpu.dot_dimension_numbers<[1], [0], [0], [1], [0, 0, 1, 1], [], []>} : vector<128x128xbf16>, vector<128x128xbf16>, vector<128x128xf32> -> vector<128x128xf32>
    %7 = arith.addf %3, %6 : vector<128x128xf32>
    %c0_6 = arith.constant 0 : index
    %c0_7 = arith.constant 0 : index
    %8 = vector.load %arg7[%c0_6, %c0_7] : memref<128x128xf32, #tpu.memory_space<vmem>>, vector<128x128xf32>
    tpu.vector_store %arg7[%c0_6, %c0_7], %7 {strides = array<i32>} : memref<128x128xf32, #tpu.memory_space<vmem>>, vector<128x128xf32>,
    %c0_i32_8 = arith.constant 0 : i32
    %9 = arith.cmpi eq, %arg1, %c0_i32_8 : i32
    %10 = arith.extui %9 : i1 to i32
    %c0_i32_9 = arith.constant 0 : i32
    %11 = arith.cmpi ne, %10, %c0_i32_9 : i32
    scf.if %11 {
      %c0_10 = arith.constant 0 : index
      %c0_11 = arith.constant 0 : index
      %12 = vector.load %arg7[%c0_10, %c0_11] : memref<128x128xf32, #tpu.memory_space<vmem>>, vector<128x128xf32>
      %c0_12 = arith.constant 0 : index
      %c0_13 = arith.constant 0 : index
      %13 = vector.load %arg4[%c0_12, %c0_13] : memref<1x128xf32, #tpu.memory_space<vmem>>, vector<1x128xf32>
      %14 = vector.broadcast %13 : vector<1x128xf32> to vector<128x128xf32>
      %15 = arith.addf %12, %14 : vector<128x128xf32>
      %cst_14 = arith.constant 0.000000e+00 : f32
      %16 = vector.broadcast %cst_14 : f32 to vector<128x128xf32>
      %17 = arith.maximumf %15, %16 : vector<128x128xf32>
      %18 = arith.truncf %17 : vector<128x128xf32> to vector<128x128xbf16>
      %c0_15 = arith.constant 0 : index
      %c0_16 = arith.constant 0 : index
      %19 = vector.load %arg5[%c0_15, %c0_16] : memref<128x128xbf16, #tpu.memory_space<vmem>>, vector<128x128xbf16>
      %cst_17 = arith.constant dense<0.000000e+00> : vector<128x128xf32>
      %20 = tpu.matmul %18, %19, %cst_17 {dimension_numbers = #tpu.dot_dimension_numbers<[1], [0], [0], [1], [0, 0, 1, 1], [], []>} : vector<128x128xbf16>, vector<128x128xbf16>, vector<128x128xf32> -> vector<128x128xf32>
      %21 = arith.truncf %20 : vector<128x128xf32> to vector<128x128xbf16>
      %c0_18 = arith.constant 0 : index
      %c0_19 = arith.constant 0 : index
      %22 = vector.load %arg6[%c0_18, %c0_19] : memref<128x128xbf16, #tpu.memory_space<vmem>>, vector<128x128xbf16>
      tpu.vector_store %arg6[%c0_18, %c0_19], %21 {strides = array<i32>} : memref<128x128xbf16, #tpu.memory_space<vmem>>, vector<128x128xbf16>,
    } else {
    }
    return
  }
  func.func @transform_0(%arg0: i32, %arg1: i32) -> (i32, i32) {
    %c0_i32 = arith.constant 0 : i32
    return %arg0, %arg1 : i32, i32
  }
  func.func @transform_1(%arg0: i32, %arg1: i32) -> (i32, i32) {
    %c0_i32 = arith.constant 0 : i32
    %c0_i32_0 = arith.constant 0 : i32
    return %arg1, %c0_i32 : i32, i32
  }
  func.func @transform_2(%arg0: i32, %arg1: i32) -> (i32, i32) {
    %c0_i32 = arith.constant 0 : i32
    %c0_i32_0 = arith.constant 0 : i32
    %c0_i32_1 = arith.constant 0 : i32
    return %c0_i32, %c0_i32_0 : i32, i32
  }
  func.func @transform_3(%arg0: i32, %arg1: i32) -> (i32, i32) {
    %c0_i32 = arith.constant 0 : i32
    %c0_i32_0 = arith.constant 0 : i32
    %c0_i32_1 = arith.constant 0 : i32
    return %c0_i32, %c0_i32_0 : i32, i32
  }
  func.func @transform_4(%arg0: i32, %arg1: i32) -> (i32, i32) {
    %c0_i32 = arith.constant 0 : i32
    %c0_i32_0 = arith.constant 0 : i32
    return %arg0, %c0_i32 : i32, i32
  }
}

module attributes {stable_mosaic.version = 11 : i64} {
  func.func @_layer2_kernel(%arg0: i32, %arg1: i32, %arg2: memref<128x128xbf16, #tpu.memory_space<vmem>>, %arg3: memref<128x128xbf16, #tpu.memory_space<vmem>>, %arg4: memref<1x128xf32, #tpu.memory_space<vmem>>, %arg5: memref<128x128xf32, #tpu.memory_space<vmem>>, %arg6: memref<128x128xf32, #tpu.memory_space<vmem>>, %arg7: memref<128x128xf32, #tpu.memory_space<vmem>>) attributes {dimension_semantics = [#tpu.dimension_semantics<parallel>, #tpu.dimension_semantics<arbitrary>], iteration_bounds = array<i64: 1, 1>, scalar_prefetch = 0 : i64, scratch_operands = 1 : i64, tpu.core_type = #tpu.core_type<tc>, window_params = [{transform_indices = @transform_0, window_bounds = array<i64: 128, 128>}, {transform_indices = @transform_1, window_bounds = array<i64: 128, 128>}, {pipeline_mode = #tpu.pipeline_mode<synchronous>, transform_indices = @transform_2, window_bounds = array<i64: 1, 128>}, {transform_indices = @transform_3, window_bounds = array<i64: 128, 128>}, {transform_indices = @transform_4, window_bounds = array<i64: 128, 128>}]} {
    %c0_i32 = arith.constant 0 : i32
    %0 = arith.cmpi eq, %arg1, %c0_i32 : i32
    %1 = arith.extui %0 : i1 to i32
    %c0_i32_0 = arith.constant 0 : i32
    %2 = arith.cmpi ne, %1, %c0_i32_0 : i32
    scf.if %2 {
      %cst_10 = arith.constant 0.000000e+00 : f32
      %12 = vector.broadcast %cst_10 : f32 to vector<128x128xf32>
      %c0_11 = arith.constant 0 : index
      %c0_12 = arith.constant 0 : index
      %13 = vector.load %arg7[%c0_11, %c0_12] : memref<128x128xf32, #tpu.memory_space<vmem>>, vector<128x128xf32>
      tpu.vector_store %arg7[%c0_11, %c0_12], %12 {strides = array<i32>} : memref<128x128xf32, #tpu.memory_space<vmem>>, vector<128x128xf32>,
    } else {
    }
    %c0 = arith.constant 0 : index
    %c0_1 = arith.constant 0 : index
    %3 = vector.load %arg7[%c0, %c0_1] : memref<128x128xf32, #tpu.memory_space<vmem>>, vector<128x128xf32>
    %c0_2 = arith.constant 0 : index
    %c0_3 = arith.constant 0 : index
    %4 = vector.load %arg2[%c0_2, %c0_3] : memref<128x128xbf16, #tpu.memory_space<vmem>>, vector<128x128xbf16>
    %c0_4 = arith.constant 0 : index
    %c0_5 = arith.constant 0 : index
    %5 = vector.load %arg3[%c0_4, %c0_5] : memref<128x128xbf16, #tpu.memory_space<vmem>>, vector<128x128xbf16>
    %cst = arith.constant dense<0.000000e+00> : vector<128x128xf32>
    %6 = tpu.matmul %4, %5, %cst {dimension_numbers = #tpu.dot_dimension_numbers<[1], [0], [0], [1], [0, 0, 1, 1], [], []>} : vector<128x128xbf16>, vector<128x128xbf16>, vector<128x128xf32> -> vector<128x128xf32>
    %7 = arith.addf %3, %6 : vector<128x128xf32>
    %c0_6 = arith.constant 0 : index
    %c0_7 = arith.constant 0 : index
    %8 = vector.load %arg7[%c0_6, %c0_7] : memref<128x128xf32, #tpu.memory_space<vmem>>, vector<128x128xf32>
    tpu.vector_store %arg7[%c0_6, %c0_7], %7 {strides = array<i32>} : memref<128x128xf32, #tpu.memory_space<vmem>>, vector<128x128xf32>,
    %c0_i32_8 = arith.constant 0 : i32
    %9 = arith.cmpi eq, %arg1, %c0_i32_8 : i32
    %10 = arith.extui %9 : i1 to i32
    %c0_i32_9 = arith.constant 0 : i32
    %11 = arith.cmpi ne, %10, %c0_i32_9 : i32
    scf.if %11 {
      %c0_10 = arith.constant 0 : index
      %c0_11 = arith.constant 0 : index
      %12 = vector.load %arg7[%c0_10, %c0_11] : memref<128x128xf32, #tpu.memory_space<vmem>>, vector<128x128xf32>
      %c0_12 = arith.constant 0 : index
      %c0_13 = arith.constant 0 : index
      %13 = vector.load %arg4[%c0_12, %c0_13] : memref<1x128xf32, #tpu.memory_space<vmem>>, vector<1x128xf32>
      %14 = vector.broadcast %13 : vector<1x128xf32> to vector<128x128xf32>
      %15 = arith.addf %12, %14 : vector<128x128xf32>
      %c0_14 = arith.constant 0 : index
      %c0_15 = arith.constant 0 : index
      %16 = vector.load %arg5[%c0_14, %c0_15] : memref<128x128xf32, #tpu.memory_space<vmem>>, vector<128x128xf32>
      tpu.vector_store %arg5[%c0_14, %c0_15], %15 {strides = array<i32>} : memref<128x128xf32, #tpu.memory_space<vmem>>, vector<128x128xf32>,
      %17 = tpu.iota {dimensions = array<i32: 1>} : vector<128x128xi32>
      %c4_i32 = arith.constant 4 : i32
      %18 = vector.broadcast %c4_i32 : i32 to vector<128x128xi32>
      %19 = arith.cmpi slt, %17, %18 : vector<128x128xi32>
      %cst_16 = arith.constant 0xFF800000 : f32
      %20 = vector.broadcast %cst_16 : f32 to vector<128x128xf32>
      %21 = arith.select %19, %15, %20 : vector<128x128xi1>, vector<128x128xf32>
      %cst_17 = arith.constant dense<0xFF800000> : vector<128xf32>
      %22 = vector.multi_reduction <maximumf>, %21, %cst_17 [1] : vector<128x128xf32> to vector<128xf32>
      %23 = vector.shape_cast %22 : vector<128xf32> to vector<128x1xf32>
      %24 = vector.broadcast %23 : vector<128x1xf32> to vector<128x128xf32>
      %25 = arith.subf %21, %24 : vector<128x128xf32>
      %26 = math.exp %25 : vector<128x128xf32>
      %cst_18 = arith.constant dense<0.000000e+00> : vector<128xf32>
      %27 = vector.multi_reduction <add>, %26, %cst_18 [1] : vector<128x128xf32> to vector<128xf32>
      %28 = vector.shape_cast %27 : vector<128xf32> to vector<128x1xf32>
      %29 = math.log %28 : vector<128x1xf32>
      %30 = vector.broadcast %29 : vector<128x1xf32> to vector<128x128xf32>
      %31 = arith.subf %25, %30 : vector<128x128xf32>
      %c0_19 = arith.constant 0 : index
      %c0_20 = arith.constant 0 : index
      %32 = vector.load %arg6[%c0_19, %c0_20] : memref<128x128xf32, #tpu.memory_space<vmem>>, vector<128x128xf32>
      tpu.vector_store %arg6[%c0_19, %c0_20], %31 {strides = array<i32>} : memref<128x128xf32, #tpu.memory_space<vmem>>, vector<128x128xf32>,
    } else {
    }
    return
  }
  func.func @transform_0(%arg0: i32, %arg1: i32) -> (i32, i32) {
    %c0_i32 = arith.constant 0 : i32
    return %arg0, %arg1 : i32, i32
  }
  func.func @transform_1(%arg0: i32, %arg1: i32) -> (i32, i32) {
    %c0_i32 = arith.constant 0 : i32
    %c0_i32_0 = arith.constant 0 : i32
    return %arg1, %c0_i32 : i32, i32
  }
  func.func @transform_2(%arg0: i32, %arg1: i32) -> (i32, i32) {
    %c0_i32 = arith.constant 0 : i32
    %c0_i32_0 = arith.constant 0 : i32
    %c0_i32_1 = arith.constant 0 : i32
    return %c0_i32, %c0_i32_0 : i32, i32
  }
  func.func @transform_3(%arg0: i32, %arg1: i32) -> (i32, i32) {
    %c0_i32 = arith.constant 0 : i32
    %c0_i32_0 = arith.constant 0 : i32
    return %arg0, %c0_i32 : i32, i32
  }
  func.func @transform_4(%arg0: i32, %arg1: i32) -> (i32, i32) {
    %c0_i32 = arith.constant 0 : i32
    %c0_i32_0 = arith.constant 0 : i32
    return %arg0, %c0_i32 : i32, i32
  }
}

</mosaic_0001>

<bundles_post_ra>
// kernel: gcn_forward.2
= control target key start
LH: loop header
LB: loop body
LE: loop exit
PB: predicated region body
PF: predicated region fallthrough
CT: control target
= control target key end

     0   :  { %s782_s1 = inlined_call_operand.vmem [shape: bf16[128,128], index: 1, kind: input, shape index: {}]   ;;  %s783_s2 = inlined_call_operand.vmem [shape: f32[1,128], index: 2, kind: input, shape index: {}]   ;;  %s784_s0 = inlined_call_operand.vmem [shape: bf16[128,128], index: 0, kind: input, shape index: {}]   ;;  %s785_s3 = inlined_call_operand.vmem [shape: bf16[128,128], index: 3, kind: input, shape index: {}]   ;;  %s786_s4 = inlined_call_operand.vmem [shape: bf16[128,128], index: 4, kind: output, shape index: {}]  }
   0x1   :  { %v585_v0 = vld [vmem:[%s782_s1 + $0x38] sm:$0xff]  ;;  %v584_v1 = vld [vmem:[%s782_s1 + $0x30] sm:$0xff]  ;;  %v583_v2 = vld [vmem:[%s782_s1 + $0x28] sm:$0xff] }
   0x2   :  { %181 = vmatpush.bf16.msra.mxu0 %v585_v0  ;;  %641 = vmatpush.bf16.msra.mxu2 %v585_v0  ;;  %v582_v3 = vld [vmem:[%s782_s1 + $0x20] sm:$0xff]  ;;  %v581_v4 = vld [vmem:[%s782_s1 + $0x18] sm:$0xff]  ;;  %v580_v5 = vld [vmem:[%s782_s1 + $0x10] sm:$0xff] }
   0x3   :  { %v579_v6 = vld [vmem:[%s782_s1 + $0x8] sm:$0xff]  ;;  %v578_v7 = vld [vmem:[%s782_s1] sm:$0xff]  ;;  %v593_v12 = vld [vmem:[%s785_s3 + $0x38] sm:$0xff] }
   0x4   :  { %v570_v8 = vld [vmem:[%s784_s0] sm:$0xff]  ;;  %v571_v10 = vld [vmem:[%s784_s0 + $0x8] sm:$0xff]  ;;  %389 = vmatpush.bf16.msra.mxu1 %v593_v12  ;;  %v592_v13 = vld [vmem:[%s785_s3 + $0x30] sm:$0xff]  ;;  %649 = vmatpush.bf16.msra.mxu3 %v593_v12 }
   0x5   :  { %v574_v9 = vld [vmem:[%s784_s0 + $0x20] sm:$0xff]  ;;  %v575_v11 = vld [vmem:[%s784_s0 + $0x28] sm:$0xff]  ;;  %v572_v16 = vld [vmem:[%s784_s0 + $0x10] sm:$0xff] }
   0x6   :  { %182 = vmatpush.bf16.msra.mxu0 %v584_v1  ;;  %642 = vmatpush.bf16.msra.mxu2 %v584_v1  ;;  %v591_v14 = vld [vmem:[%s785_s3 + $0x28] sm:$0xff]  ;;  %v590_v15 = vld [vmem:[%s785_s3 + $0x20] sm:$0xff]  ;;  %v576_v17 = vld [vmem:[%s784_s0 + $0x30] sm:$0xff] }
   0x7   :  { %v573_v18 = vld [vmem:[%s784_s0 + $0x18] sm:$0xff]  ;;  %v588_v21 = vld [vmem:[%s785_s3 + $0x10] sm:$0xff]  ;;  %v587_v22 = vld [vmem:[%s785_s3 + $0x8] sm:$0xff] }
   0x8   :  { %390 = vmatpush.bf16.msra.mxu1 %v592_v13  ;;  %650 = vmatpush.bf16.msra.mxu3 %v592_v13  ;;  %v577_v19 = vld [vmem:[%s784_s0 + $0x38] sm:$0xff]  ;;  %v586_v23 = vld [vmem:[%s785_s3] sm:$0xff] }
   0x9   :  { %v589_v20 = vld [vmem:[%s785_s3 + $0x18] sm:$0xff]  ;;  %v657_v25 = vld [vmem:[%s783_s2] ss:$0 sm:$0xff] }
   0xa   :  { %183 = vmatpush.bf16.msra.mxu0 %v583_v2  ;;  %643 = vmatpush.bf16.msra.mxu2 %v583_v2 }
   0xc   :  { %391 = vmatpush.bf16.msra.mxu1 %v591_v14  ;;  %651 = vmatpush.bf16.msra.mxu3 %v591_v14 }
   0xe   :  { %184 = vmatpush.bf16.msra.mxu0 %v582_v3  ;;  %644 = vmatpush.bf16.msra.mxu2 %v582_v3 }
  0x10   :  { %392 = vmatpush.bf16.msra.mxu1 %v590_v15  ;;  %652 = vmatpush.bf16.msra.mxu3 %v590_v15 }
  0x12   :  { %185 = vmatpush.bf16.msra.mxu0 %v581_v4  ;;  %645 = vmatpush.bf16.msra.mxu2 %v581_v4 }
  0x14   :  { %393 = vmatpush.bf16.msra.mxu1 %v589_v20  ;;  %653 = vmatpush.bf16.msra.mxu3 %v589_v20 }
  0x16   :  { %186 = vmatpush.bf16.msra.mxu0 %v580_v5  ;;  %646 = vmatpush.bf16.msra.mxu2 %v580_v5 }
  0x18   :  { %394 = vmatpush.bf16.msra.mxu1 %v588_v21  ;;  %654 = vmatpush.bf16.msra.mxu3 %v588_v21 }
  0x1a   :  { %187 = vmatpush.bf16.msra.mxu0 %v579_v6  ;;  %647 = vmatpush.bf16.msra.mxu2 %v579_v6 }
  0x1c   :  { %395 = vmatpush.bf16.msra.mxu1 %v587_v22  ;;  %655 = vmatpush.bf16.msra.mxu3 %v587_v22 }
  0x1e   :  { %188 = vmatpush.bf16.msra.mxu0 %v578_v7  ;;  %648 = vmatpush.bf16.msra.mxu2 %v578_v7 }
  0x20   :  { %396 = vmatpush.bf16.msra.mxu1 %v586_v23  ;;  %656 = vmatpush.bf16.msra.mxu3 %v586_v23 }
  0x21   :  { %189 = vmatmul.bf16.vlgmr.msra.gmra.mxu0 %v570_v8  ;;  %209 = vmatmul.bf16.vlgmr.msra.gmra.mxu2 %v574_v9 }
  0x31   :  { %194 = vmatmul.bf16.gmra.mxu0 %v571_v10  ;;  %214 = vmatmul.bf16.gmra.mxu2 %v575_v11 }
  0x41   :  { %199 = vmatmul.bf16.gmra.mxu0 %v572_v16  ;;  %219 = vmatmul.bf16.gmra.mxu2 %v576_v17 }
  0x51   :  { %204 = vmatmul.bf16.gmra.mxu0 %v573_v18  ;;  %224 = vmatmul.bf16.gmra.mxu2 %v577_v19 }
  0x9e   :  { %v190_v24 = vpop.f32.mrf.mxu0 }
  0x9f   :  { %v285_v26 = vadd.f32 %v657_v25, %v190_v24 }
  0xa1   :  { %v301_v29 = vmax.f32 %v285_v26, 0.0 }
  0xa4   :  { %v210_v27 = vpop.f32.mrf.mxu2 }
  0xa5   :  { %v293_v32 = vadd.f32 %v657_v25, %v210_v27 }
  0xa6   :  { %v192_v28 = vpop.f32.mrf.mxu0 }
  0xa7   :  { %v286_v30 = vadd.f32 %v657_v25, %v192_v28  ;;  %v309_v37 = vmax.f32 %v293_v32, 0.0 }
  0xa9   :  { %v302_v31 = vmax.f32 %v286_v30, 0.0 }
  0xab   :  { %v317_v33 = vpack.c.bf16 %v302_v31, %v301_v29 }
  0xac   :  { %v212_v34 = vpop.f32.mrf.mxu2 }
  0xad   :  { %v294_v35 = vadd.f32 %v657_v25, %v212_v34  ;;  %397 = vmatmul.bf16.vlgmr.msra.gmra.mxu1 %v317_v33 }
  0xae   :  { %v195_v36 = vpop.f32.mrf.mxu0 }
  0xaf   :  { %v310_v38 = vmax.f32 %v294_v35, 0.0  ;;  %v287_v40 = vadd.f32 %v657_v25, %v195_v36 }
  0xb1   :  { %v321_v39 = vpack.c.bf16 %v310_v38, %v309_v37  ;;  %v303_v43 = vmax.f32 %v287_v40, 0.0 }
  0xb3   :  { %417 = vmatmul.bf16.vlgmr.msra.gmra.mxu3 %v321_v39 }
  0xb4   :  { %v215_v41 = vpop.f32.mrf.mxu2 }
  0xb5   :  { %v295_v46 = vadd.f32 %v657_v25, %v215_v41 }
  0xb6   :  { %v197_v42 = vpop.f32.mrf.mxu0 }
  0xb7   :  { %v288_v44 = vadd.f32 %v657_v25, %v197_v42  ;;  %v311_v51 = vmax.f32 %v295_v46, 0.0 }
  0xb9   :  { %v304_v45 = vmax.f32 %v288_v44, 0.0 }
  0xbb   :  { %v318_v47 = vpack.c.bf16 %v304_v45, %v303_v43 }
  0xbc   :  { %v217_v48 = vpop.f32.mrf.mxu2 }
  0xbd   :  { %v296_v49 = vadd.f32 %v657_v25, %v217_v48  ;;  %402 = vmatmul.bf16.gmra.mxu1 %v318_v47 }
  0xbe   :  { %v200_v50 = vpop.f32.mrf.mxu0 }
  0xbf   :  { %v312_v52 = vmax.f32 %v296_v49, 0.0  ;;  %v289_v54 = vadd.f32 %v657_v25, %v200_v50 }
  0xc1   :  { %v322_v53 = vpack.c.bf16 %v312_v52, %v311_v51  ;;  %v305_v57 = vmax.f32 %v289_v54, 0.0 }
  0xc3   :  { %422 = vmatmul.bf16.gmra.mxu3 %v322_v53 }
  0xc4   :  { %v220_v55 = vpop.f32.mrf.mxu2 }
  0xc5   :  { %v297_v60 = vadd.f32 %v657_v25, %v220_v55 }
  0xc6   :  { %v202_v56 = vpop.f32.mrf.mxu0 }
  0xc7   :  { %v290_v58 = vadd.f32 %v657_v25, %v202_v56  ;;  %v313_v1 = vmax.f32 %v297_v60, 0.0 }
  0xc9   :  { %v306_v59 = vmax.f32 %v290_v58, 0.0 }
  0xcb   :  { %v319_v61 = vpack.c.bf16 %v306_v59, %v305_v57 }
  0xcc   :  { %v222_v62 = vpop.f32.mrf.mxu2 }
  0xcd   :  { %v298_v63 = vadd.f32 %v657_v25, %v222_v62  ;;  %407 = vmatmul.bf16.gmra.mxu1 %v319_v61 }
  0xce   :  { %v205_v0 = vpop.f32.mrf.mxu0 }
  0xcf   :  { %v314_v2 = vmax.f32 %v298_v63, 0.0  ;;  %v291_v4 = vadd.f32 %v657_v25, %v205_v0 }
  0xd1   :  { %v323_v3 = vpack.c.bf16 %v314_v2, %v313_v1  ;;  %v307_v7 = vmax.f32 %v291_v4, 0.0 }
  0xd3   :  { %427 = vmatmul.bf16.gmra.mxu3 %v323_v3 }
  0xd4   :  { %v225_v5 = vpop.f32.mrf.mxu2 }
  0xd5   :  { %v299_v10 = vadd.f32 %v657_v25, %v225_v5 }
  0xd6   :  { %v207_v6 = vpop.f32.mrf.mxu0 }
  0xd7   :  { %v292_v8 = vadd.f32 %v657_v25, %v207_v6  ;;  %v315_v14 = vmax.f32 %v299_v10, 0.0 }
  0xd9   :  { %v308_v9 = vmax.f32 %v292_v8, 0.0 }
  0xdb   :  { %v320_v11 = vpack.c.bf16 %v308_v9, %v307_v7 }
  0xdc   :  { %v227_v12 = vpop.f32.mrf.mxu2 }
  0xdd   :  { %v300_v13 = vadd.f32 %v657_v25, %v227_v12  ;;  %412 = vmatmul.bf16.gmra.mxu1 %v320_v11 }
  0xdf   :  { %v316_v15 = vmax.f32 %v300_v13, 0.0 }
  0xe1   :  { %v324_v16 = vpack.c.bf16 %v316_v15, %v315_v14 }
  0xe3   :  { %432 = vmatmul.bf16.gmra.mxu3 %v324_v16 }
 0x12a   :  { %v398_v17 = vpop.f32.mrf.mxu1 }
 0x132   :  { %v400_v18 = vpop.f32.mrf.mxu1 }
 0x133   :  { %v597_v19 = vpack.c.bf16 %v400_v18, %v398_v17 }
 0x135   :  { %598 = vst [vmem:[%s786_s4] sm:$0xff] %v597_v19  }
 0x136   :  { %v418_v20 = vpop.f32.mrf.mxu3 }
 0x13a   :  { %v403_v21 = vpop.f32.mrf.mxu1 }
 0x13e   :  { %v420_v22 = vpop.f32.mrf.mxu3 }
 0x13f   :  { %v617_v23 = vpack.c.bf16 %v420_v22, %v418_v20 }
 0x141   :  { %637 = vst [vmem:[%s786_s4 + $0x20] sm:$0xff] %v617_v23  }
 0x142   :  { %v405_v24 = vpop.f32.mrf.mxu1 }
 0x143   :  { %v602_v25 = vpack.c.bf16 %v405_v24, %v403_v21 }
 0x145   :  { %634 = vst [vmem:[%s786_s4 + $0x8] sm:$0xff] %v602_v25  }
 0x146   :  { %v423_v26 = vpop.f32.mrf.mxu3 }
 0x14a   :  { %v408_v27 = vpop.f32.mrf.mxu1 }
 0x14e   :  { %v425_v28 = vpop.f32.mrf.mxu3 }
 0x14f   :  { %v622_v29 = vpack.c.bf16 %v425_v28, %v423_v26 }
 0x151   :  { %638 = vst [vmem:[%s786_s4 + $0x28] sm:$0xff] %v622_v29  }
 0x152   :  { %v410_v30 = vpop.f32.mrf.mxu1 }
 0x153   :  { %v607_v31 = vpack.c.bf16 %v410_v30, %v408_v27 }
 0x155   :  { %635 = vst [vmem:[%s786_s4 + $0x10] sm:$0xff] %v607_v31  }
 0x156   :  { %v428_v32 = vpop.f32.mrf.mxu3 }
 0x15a   :  { %v413_v33 = vpop.f32.mrf.mxu1 }
 0x15e   :  { %v430_v34 = vpop.f32.mrf.mxu3 }
 0x15f   :  { %v627_v35 = vpack.c.bf16 %v430_v34, %v428_v32 }
 0x161   :  { %639 = vst [vmem:[%s786_s4 + $0x30] sm:$0xff] %v627_v35  }
 0x162   :  { %v415_v36 = vpop.f32.mrf.mxu1 }
 0x163   :  { %v612_v37 = vpack.c.bf16 %v415_v36, %v413_v33 }
 0x165   :  { %636 = vst [vmem:[%s786_s4 + $0x18] sm:$0xff] %v612_v37  }
 0x166   :  { %v433_v38 = vpop.f32.mrf.mxu3 }
 0x16e   :  { %v435_v39 = vpop.f32.mrf.mxu3 }
 0x16f   :  { %v632_v40 = vpack.c.bf16 %v435_v39, %v433_v38 }
 0x171   :  { %640 = vst [vmem:[%s786_s4 + $0x38] sm:$0xff] %v632_v40  }

// kernel: gcn_forward.3
= control target key start
LH: loop header
LB: loop body
LE: loop exit
PB: predicated region body
PF: predicated region fallthrough
CT: control target
= control target key end

     0   :  { %v316_v16 = vlaneseq  ;;  %s1037_s1 = inlined_call_operand.vmem [shape: bf16[128,128], index: 1, kind: input, shape index: {}]   ;;  %s1038_s2 = inlined_call_operand.vmem [shape: f32[1,128], index: 2, kind: input, shape index: {}]   ;;  %s1039_s0 = inlined_call_operand.vmem [shape: bf16[128,128], index: 0, kind: input, shape index: {}]   ;;  %s1040_s3 = inlined_call_operand.vmem [shape: f32[128,128], index: 3, kind: output, shape index: {0}]   ;;  %s1041_s4 = inlined_call_operand.vmem [shape: f32[128,128], index: 4, kind: output, shape index: {1}]  }
   0x1   :  { %v598_v0 = vld [vmem:[%s1037_s1 + $0x38] sm:$0xff]  ;;  %v597_v1 = vld [vmem:[%s1037_s1 + $0x30] sm:$0xff]  ;;  %v596_v2 = vld [vmem:[%s1037_s1 + $0x28] sm:$0xff] }
   0x2   :  { %180 = vmatpush.bf16.msra.mxu0 %v598_v0  ;;  %599 = vmatpush.bf16.msra.mxu1 %v598_v0  ;;  %v595_v3 = vld [vmem:[%s1037_s1 + $0x20] sm:$0xff]  ;;  %v594_v4 = vld [vmem:[%s1037_s1 + $0x18] sm:$0xff]  ;;  %v593_v5 = vld [vmem:[%s1037_s1 + $0x10] sm:$0xff]  ;;  %v761_v17 = vand.u32 127, %v316_v16 }
   0x3   :  { %600 = vmatpush.bf16.msra.mxu2 %v598_v0  ;;  %601 = vmatpush.bf16.msra.mxu3 %v598_v0  ;;  %v592_v6 = vld [vmem:[%s1037_s1 + $0x8] sm:$0xff]  ;;  %v591_v7 = vld [vmem:[%s1037_s1] sm:$0xff]  ;;  %v585_v9 = vld [vmem:[%s1039_s0 + $0x10] sm:$0xff] }
   0x4   :  { %v583_v8 = vld [vmem:[%s1039_s0] sm:$0xff]  ;;  %v589_v11 = vld [vmem:[%s1039_s0 + $0x30] sm:$0xff]  ;;  %v584_v12 = vld [vmem:[%s1039_s0 + $0x8] sm:$0xff]  ;;  %vm318_vm0 = vcmp.lt.s32.totalorder %v761_v17, 4 }
   0x5   :  { %v587_v10 = vld [vmem:[%s1039_s0 + $0x20] sm:$0xff]  ;;  %v586_v13 = vld [vmem:[%s1039_s0 + $0x18] sm:$0xff]  ;;  %v588_v14 = vld [vmem:[%s1039_s0 + $0x28] sm:$0xff] }
   0x6   :  { %181 = vmatpush.bf16.msra.mxu0 %v597_v1  ;;  %602 = vmatpush.bf16.msra.mxu1 %v597_v1  ;;  %v590_v15 = vld [vmem:[%s1039_s0 + $0x38] sm:$0xff]  ;;  %v766_v18 = vld [vmem:[%s1038_s2] ss:$0 sm:$0xff] }
   0x7   :  { %603 = vmatpush.bf16.msra.mxu2 %v597_v1  ;;  %604 = vmatpush.bf16.msra.mxu3 %v597_v1 }
   0xa   :  { %182 = vmatpush.bf16.msra.mxu0 %v596_v2  ;;  %605 = vmatpush.bf16.msra.mxu1 %v596_v2 }
   0xb   :  { %606 = vmatpush.bf16.msra.mxu2 %v596_v2  ;;  %607 = vmatpush.bf16.msra.mxu3 %v596_v2 }
   0xe   :  { %183 = vmatpush.bf16.msra.mxu0 %v595_v3  ;;  %608 = vmatpush.bf16.msra.mxu1 %v595_v3 }
   0xf   :  { %609 = vmatpush.bf16.msra.mxu2 %v595_v3  ;;  %610 = vmatpush.bf16.msra.mxu3 %v595_v3 }
  0x12   :  { %184 = vmatpush.bf16.msra.mxu0 %v594_v4  ;;  %611 = vmatpush.bf16.msra.mxu1 %v594_v4 }
  0x13   :  { %612 = vmatpush.bf16.msra.mxu2 %v594_v4  ;;  %613 = vmatpush.bf16.msra.mxu3 %v594_v4 }
  0x16   :  { %185 = vmatpush.bf16.msra.mxu0 %v593_v5  ;;  %614 = vmatpush.bf16.msra.mxu1 %v593_v5 }
  0x17   :  { %615 = vmatpush.bf16.msra.mxu2 %v593_v5  ;;  %616 = vmatpush.bf16.msra.mxu3 %v593_v5 }
  0x1a   :  { %186 = vmatpush.bf16.msra.mxu0 %v592_v6  ;;  %617 = vmatpush.bf16.msra.mxu1 %v592_v6 }
  0x1b   :  { %618 = vmatpush.bf16.msra.mxu2 %v592_v6  ;;  %619 = vmatpush.bf16.msra.mxu3 %v592_v6 }
  0x1e   :  { %187 = vmatpush.bf16.msra.mxu0 %v591_v7  ;;  %620 = vmatpush.bf16.msra.mxu1 %v591_v7 }
  0x1f   :  { %621 = vmatpush.bf16.msra.mxu2 %v591_v7  ;;  %622 = vmatpush.bf16.msra.mxu3 %v591_v7 }
  0x21   :  { %188 = vmatmul.bf16.vlgmr.msra.gmra.mxu0 %v583_v8  ;;  %198 = vmatmul.bf16.vlgmr.msra.gmra.mxu1 %v585_v9 }
  0x22   :  { %208 = vmatmul.bf16.vlgmr.msra.gmra.mxu2 %v587_v10  ;;  %218 = vmatmul.bf16.vlgmr.msra.gmra.mxu3 %v589_v11 }
  0x31   :  { %193 = vmatmul.bf16.gmra.mxu0 %v584_v12  ;;  %203 = vmatmul.bf16.gmra.mxu1 %v586_v13 }
  0x32   :  { %213 = vmatmul.bf16.gmra.mxu2 %v588_v14  ;;  %223 = vmatmul.bf16.gmra.mxu3 %v590_v15 }
  0x9e   :  { %v189_v19 = vpop.f32.mrf.mxu0  ;;  %v199_v20 = vpop.f32.mrf.mxu1 }
  0x9f   :  { %v284_v21 = vadd.f32 %v766_v18, %v189_v19  ;;  %v288_v22 = vadd.f32 %v766_v18, %v199_v20 }
  0xa1   :  { %300 = vst [vmem:[%s1040_s3] sm:$0xff] %v284_v21  ;;  %v776_v23 = vsel %vm318_vm0, %v288_v22, -inf  ;;  %v780_v24 = vsel %vm318_vm0, %v284_v21, -inf }
  0xa2   :  { %304 = vst [vmem:[%s1040_s3 + $0x20] sm:$0xff] %v288_v22  ;;  %343 = vmax.xlane.f32.xlu2 %v776_v23  ;;  %335 = vmax.xlane.f32.xlu0 %v780_v24 }
  0xa5   :  { %v209_v25 = vpop.f32.mrf.mxu2  ;;  %v219_v26 = vpop.f32.mrf.mxu3 }
  0xa6   :  { %v292_v27 = vadd.f32 %v766_v18, %v209_v25  ;;  %v296_v28 = vadd.f32 %v766_v18, %v219_v26  ;;  %v191_v29 = vpop.f32.mrf.mxu0  ;;  %v201_v30 = vpop.f32.mrf.mxu1 }
  0xa7   :  { %v285_v31 = vadd.f32 %v766_v18, %v191_v29  ;;  %v289_v32 = vadd.f32 %v766_v18, %v201_v30 }
  0xa8   :  { %308 = vst [vmem:[%s1040_s3 + $0x40] sm:$0xff] %v292_v27  ;;  %v796_v33 = vsel %vm318_vm0, %v292_v27, -inf  ;;  %v800_v34 = vsel %vm318_vm0, %v296_v28, -inf }
  0xa9   :  { %312 = vst [vmem:[%s1040_s3 + $0x60] sm:$0xff] %v296_v28  ;;  %v825_v43 = vsel %vm318_vm0, %v289_v32, -inf  ;;  %v829_v44 = vsel %vm318_vm0, %v285_v31, -inf }
  0xaa   :  { %301 = vst [vmem:[%s1040_s3 + $0x8] sm:$0xff] %v285_v31  ;;  %351 = vmax.xlane.f32.xlu2 %v796_v33  ;;  %359 = vmax.xlane.f32.xlu0 %v800_v34 }
  0xab   :  { %305 = vst [vmem:[%s1040_s3 + $0x28] sm:$0xff] %v289_v32 }
  0xad   :  { %v211_v35 = vpop.f32.mrf.mxu2  ;;  %v221_v36 = vpop.f32.mrf.mxu3 }
  0xae   :  { %v293_v37 = vadd.f32 %v766_v18, %v211_v35  ;;  %v297_v38 = vadd.f32 %v766_v18, %v221_v36  ;;  %v194_v39 = vpop.f32.mrf.mxu0  ;;  %v204_v40 = vpop.f32.mrf.mxu1 }
  0xaf   :  { %v286_v41 = vadd.f32 %v766_v18, %v194_v39  ;;  %v290_v42 = vadd.f32 %v766_v18, %v204_v40 }
  0xb0   :  { %309 = vst [vmem:[%s1040_s3 + $0x48] sm:$0xff] %v293_v37  ;;  %v328_v54 = vsel %vm318_vm0, %v293_v37, -inf  ;;  %v907_v2 = vsel %vm318_vm0, %v297_v38, -inf }
  0xb1   :  { %313 = vst [vmem:[%s1040_s3 + $0x68] sm:$0xff] %v297_v38  ;;  %v833_v45 = vsel %vm318_vm0, %v286_v41, -inf  ;;  %v871_v60 = vsel %vm318_vm0, %v290_v42, -inf }
  0xb2   :  { %302 = vst [vmem:[%s1040_s3 + $0x10] sm:$0xff] %v286_v41  ;;  %345 = vmax.xlane.f32.xlu2 %v825_v43  ;;  %337 = vmax.xlane.f32.xlu0 %v829_v44 }
  0xb3   :  { %339 = vmax.xlane.f32.xlu1 %v833_v45  ;;  %306 = vst [vmem:[%s1040_s3 + $0x30] sm:$0xff] %v290_v42 }
  0xb5   :  { %v214_v46 = vpop.f32.mrf.mxu2  ;;  %v224_v47 = vpop.f32.mrf.mxu3 }
  0xb6   :  { %v294_v48 = vadd.f32 %v766_v18, %v214_v46  ;;  %v196_v49 = vpop.f32.mrf.mxu0  ;;  %v206_v50 = vpop.f32.mrf.mxu1  ;;  %v298_v55 = vadd.f32 %v766_v18, %v224_v47 }
  0xb7   :  { %v287_v51 = vadd.f32 %v766_v18, %v196_v49  ;;  %v291_v52 = vadd.f32 %v766_v18, %v206_v50 }
  0xb8   :  { %310 = vst [vmem:[%s1040_s3 + $0x50] sm:$0xff] %v294_v48  ;;  %v852_v53 = vsel %vm318_vm0, %v294_v48, -inf  ;;  %v892_v63 = vsel %vm318_vm0, %v298_v55, -inf }
  0xb9   :  { %303 = vst [vmem:[%s1040_s3 + $0x18] sm:$0xff] %v287_v51  ;;  %v887_v62 = vsel %vm318_vm0, %v287_v51, -inf  ;;  %v902_v1 = vsel %vm318_vm0, %v291_v52, -inf }
  0xba   :  { %353 = vmax.xlane.f32.xlu0 %v328_v54  ;;  %307 = vst [vmem:[%s1040_s3 + $0x38] sm:$0xff] %v291_v52 }
  0xbb   :  { %355 = vmax.xlane.f32.xlu1 %v852_v53  ;;  %314 = vst [vmem:[%s1040_s3 + $0x70] sm:$0xff] %v298_v55 }
  0xbd   :  { %v216_v56 = vpop.f32.mrf.mxu2  ;;  %v226_v57 = vpop.f32.mrf.mxu3 }
  0xbe   :  { %v295_v58 = vadd.f32 %v766_v18, %v216_v56  ;;  %v299_v59 = vadd.f32 %v766_v18, %v226_v57 }
  0xc0   :  { %311 = vst [vmem:[%s1040_s3 + $0x58] sm:$0xff] %v295_v58  ;;  %v878_v61 = vsel %vm318_vm0, %v295_v58, -inf  ;;  %v896_v0 = vsel %vm318_vm0, %v299_v59, -inf }
  0xc1   :  { %357 = vmax.xlane.f32.xlu2 %v878_v61  ;;  %315 = vst [vmem:[%s1040_s3 + $0x78] sm:$0xff] %v299_v59 }
  0xc2   :  { %347 = vmax.xlane.f32.xlu0 %v871_v60 }
  0xc3   :  { %341 = vmax.xlane.f32.xlu1 %v887_v62 }
  0xc9   :  { %363 = vmax.xlane.f32.xlu2 %v892_v63 }
  0xca   :  { %365 = vmax.xlane.f32.xlu0 %v896_v0 }
  0xcb   :  { %349 = vmax.xlane.f32.xlu1 %v902_v1 }
  0xd3   :  { %361 = vmax.xlane.f32.xlu1 %v907_v2 }
 0x115   :  { %v344_v3 = vpop.xlane.xlu2 %343  ;;  %v336_v4 = vpop.xlane.xlu0 %335 }
 0x116   :  { %v911_v5 = vsub.f32 %v776_v23, %v344_v3  ;;  %v914_v6 = vsub.f32 %v780_v24, %v336_v4 }
 0x118   :  { %v391_v7 = vmul.f32 1.442695, %v911_v5  ;;  %v383_v8 = vmul.f32 1.442695, %v914_v6 }
 0x11a   :  { %624 = vpow2.f32 %v391_v7 }
 0x11b   :  { %626 = vpow2.f32 %v383_v8 }
 0x11d   :  { %v352_v9 = vpop.xlane.xlu2 %351  ;;  %v360_v10 = vpop.xlane.xlu0 %359 }
 0x11e   :  { %v919_v11 = vsub.f32 %v796_v33, %v352_v9  ;;  %v922_v12 = vsub.f32 %v800_v34, %v360_v10 }
 0x120   :  { %v625_v13 = vpop.eup %624  ;;  %v399_v14 = vmul.f32 1.442695, %v919_v11  ;;  %v407_v15 = vmul.f32 1.442695, %v922_v12 }
 0x121   :  { %v627_v16 = vpop.eup %626  ;;  %423 = vadd.xlane.f32.xlu2 %v625_v13 }
 0x122   :  { %628 = vpow2.f32 %v399_v14  ;;  %415 = vadd.xlane.f32.xlu1 %v627_v16 }
 0x123   :  { %630 = vpow2.f32 %v407_v15 }
 0x125   :  { %v346_v17 = vpop.xlane.xlu2 %345  ;;  %v338_v18 = vpop.xlane.xlu0 %337 }
 0x126   :  { %v927_v19 = vsub.f32 %v825_v43, %v346_v17  ;;  %v930_v20 = vsub.f32 %v829_v44, %v338_v18  ;;  %v340_v21 = vpop.xlane.xlu1 %339 }
 0x127   :  { %v935_v26 = vsub.f32 %v833_v45, %v340_v21 }
 0x128   :  { %v629_v22 = vpop.eup %628  ;;  %v393_v23 = vmul.f32 1.442695, %v927_v19  ;;  %v385_v24 = vmul.f32 1.442695, %v930_v20 }
 0x129   :  { %v631_v25 = vpop.eup %630  ;;  %431 = vadd.xlane.f32.xlu0 %v629_v22  ;;  %v387_v27 = vmul.f32 1.442695, %v935_v26 }
 0x12a   :  { %632 = vpow2.f32 %v393_v23  ;;  %439 = vadd.xlane.f32.xlu1 %v631_v25 }
 0x12b   :  { %634 = vpow2.f32 %v385_v24 }
 0x12c   :  { %636 = vpow2.f32 %v387_v27 }
 0x12d   :  { %v354_v28 = vpop.xlane.xlu0 %353 }
 0x12e   :  { %v938_v29 = vsub.f32 %v328_v54, %v354_v28  ;;  %v356_v30 = vpop.xlane.xlu1 %355 }
 0x12f   :  { %v941_v31 = vsub.f32 %v852_v53, %v356_v30 }
 0x130   :  { %v633_v32 = vpop.eup %632  ;;  %v401_v33 = vmul.f32 1.442695, %v938_v29 }
 0x131   :  { %v635_v34 = vpop.eup %634  ;;  %v403_v35 = vmul.f32 1.442695, %v941_v31  ;;  %425 = vadd.xlane.f32.xlu0 %v633_v32 }
 0x132   :  { %638 = vpow2.f32 %v401_v33  ;;  %417 = vadd.xlane.f32.xlu2 %v635_v34  ;;  %v637_v41 = vpop.eup %636 }
 0x133   :  { %640 = vpow2.f32 %v403_v35 }
 0x134   :  { %v358_v36 = vpop.xlane.xlu2 %357 }
 0x135   :  { %v946_v37 = vsub.f32 %v878_v61, %v358_v36  ;;  %v348_v38 = vpop.xlane.xlu0 %347 }
 0x136   :  { %v949_v39 = vsub.f32 %v871_v60, %v348_v38  ;;  %v342_v40 = vpop.xlane.xlu1 %341 }
 0x137   :  { %v405_v42 = vmul.f32 1.442695, %v946_v37  ;;  %v954_v46 = vsub.f32 %v887_v62, %v342_v40 }
 0x138   :  { %v639_v43 = vpop.eup %638  ;;  %v395_v44 = vmul.f32 1.442695, %v949_v39 }
 0x139   :  { %v641_v45 = vpop.eup %640  ;;  %642 = vpow2.f32 %v405_v42  ;;  %419 = vadd.xlane.f32.xlu0 %v637_v41  ;;  %433 = vadd.xlane.f32.xlu1 %v639_v43  ;;  %v389_v48 = vmul.f32 1.442695, %v954_v46 }
 0x13a   :  { %644 = vpow2.f32 %v395_v44  ;;  %435 = vadd.xlane.f32.xlu2 %v641_v45 }
 0x13b   :  { %646 = vpow2.f32 %v389_v48 }
 0x13c   :  { %v364_v47 = vpop.xlane.xlu2 %363 }
 0x13d   :  { %v958_v49 = vsub.f32 %v892_v63, %v364_v47  ;;  %v366_v53 = vpop.xlane.xlu0 %365 }
 0x13e   :  { %v350_v50 = vpop.xlane.xlu1 %349  ;;  %v966_v57 = vsub.f32 %v896_v0, %v366_v53 }
 0x13f   :  { %v643_v51 = vpop.eup %642  ;;  %v411_v52 = vmul.f32 1.442695, %v958_v49  ;;  %v962_v54 = vsub.f32 %v902_v1, %v350_v50 }
 0x140   :  { %v645_v55 = vpop.eup %644  ;;  %v413_v58 = vmul.f32 1.442695, %v966_v57 }
 0x141   :  { %v397_v56 = vmul.f32 1.442695, %v962_v54  ;;  %437 = vadd.xlane.f32.xlu0 %v643_v51  ;;  %427 = vadd.xlane.f32.xlu1 %v645_v55  ;;  %648 = vpow2.f32 %v411_v52  ;;  %v647_v60 = vpop.eup %646 }
 0x143   :  { %650 = vpow2.f32 %v397_v56 }
 0x144   :  { %652 = vpow2.f32 %v413_v58 }
 0x146   :  { %v362_v59 = vpop.xlane.xlu1 %361 }
 0x147   :  { %v970_v61 = vsub.f32 %v907_v2, %v362_v59  ;;  %v649_v62 = vpop.eup %648 }
 0x149   :  { %v651_v63 = vpop.eup %650  ;;  %v409_v1 = vmul.f32 1.442695, %v970_v61  ;;  %443 = vadd.xlane.f32.xlu0 %v649_v62  ;;  %421 = vadd.xlane.f32.xlu1 %v647_v60 }
 0x14a   :  { %429 = vadd.xlane.f32.xlu2 %v651_v63  ;;  %v653_v3 = vpop.eup %652 }
 0x14b   :  { %654 = vpow2.f32 %v409_v1 }
 0x151   :  { %v655_v0 = vpop.eup %654  ;;  %445 = vadd.xlane.f32.xlu1 %v653_v3 }
 0x152   :  { %441 = vadd.xlane.f32.xlu2 %v655_v0 }
 0x194   :  { %v424_v4 = vpop.xlane.xlu2 %423 }
 0x195   :  { %656 = vlog2.f32 %v424_v4  ;;  %v416_v7 = vpop.xlane.xlu1 %415 }
 0x196   :  { %658 = vlog2.f32 %v416_v7 }
 0x19b   :  { %v657_v8 = vpop.eup %656 }
 0x19c   :  { %v659_v2 = vpop.eup %658  ;;  %v456_v9 = vmul.f32 0.6931472, %v657_v8  ;;  %v432_v10 = vpop.xlane.xlu0 %431 }
 0x19d   :  { %v448_v13 = vmul.f32 0.6931472, %v659_v2  ;;  %660 = vlog2.f32 %v432_v10  ;;  %v440_v14 = vpop.xlane.xlu1 %439 }
 0x19e   :  { %v483_v15 = vsub.f32 %v911_v5, %v456_v9  ;;  %662 = vlog2.f32 %v440_v14 }
 0x19f   :  { %v479_v16 = vsub.f32 %v914_v6, %v448_v13 }
 0x1a0   :  { %499 = vst [vmem:[%s1041_s4 + $0x20] sm:$0xff] %v483_v15 }
 0x1a1   :  { %495 = vst [vmem:[%s1041_s4] sm:$0xff] %v479_v16 }
 0x1a3   :  { %v661_v17 = vpop.eup %660 }
 0x1a4   :  { %v663_v18 = vpop.eup %662  ;;  %v464_v21 = vmul.f32 0.6931472, %v661_v17  ;;  %v426_v22 = vpop.xlane.xlu0 %425 }
 0x1a5   :  { %v472_v23 = vmul.f32 0.6931472, %v663_v18  ;;  %v418_v24 = vpop.xlane.xlu2 %417  ;;  %664 = vlog2.f32 %v426_v22 }
 0x1a6   :  { %v487_v5 = vsub.f32 %v919_v11, %v464_v21  ;;  %666 = vlog2.f32 %v418_v24 }
 0x1a7   :  { %v491_v6 = vsub.f32 %v922_v12, %v472_v23 }
 0x1a8   :  { %503 = vst [vmem:[%s1041_s4 + $0x40] sm:$0xff] %v487_v5 }
 0x1a9   :  { %507 = vst [vmem:[%s1041_s4 + $0x60] sm:$0xff] %v491_v6 }
 0x1ab   :  { %v665_v25 = vpop.eup %664 }
 0x1ac   :  { %v667_v27 = vpop.eup %666  ;;  %v458_v28 = vmul.f32 0.6931472, %v665_v25  ;;  %v420_v30 = vpop.xlane.xlu0 %419 }
 0x1ad   :  { %v434_v32 = vpop.xlane.xlu1 %433  ;;  %v450_v33 = vmul.f32 0.6931472, %v667_v27  ;;  %668 = vlog2.f32 %v420_v30  ;;  %v436_v34 = vpop.xlane.xlu2 %435 }
 0x1ae   :  { %v484_v11 = vsub.f32 %v927_v19, %v458_v28  ;;  %670 = vlog2.f32 %v436_v34 }
 0x1af   :  { %v480_v12 = vsub.f32 %v930_v20, %v450_v33  ;;  %672 = vlog2.f32 %v434_v32 }
 0x1b0   :  { %500 = vst [vmem:[%s1041_s4 + $0x28] sm:$0xff] %v484_v11 }
 0x1b1   :  { %496 = vst [vmem:[%s1041_s4 + $0x8] sm:$0xff] %v480_v12 }
 0x1b3   :  { %v669_v35 = vpop.eup %668 }
 0x1b4   :  { %v671_v36 = vpop.eup %670  ;;  %v452_v38 = vmul.f32 0.6931472, %v669_v35  ;;  %v438_v40 = vpop.xlane.xlu0 %437 }
 0x1b5   :  { %v428_v41 = vpop.xlane.xlu1 %427  ;;  %v673_v42 = vpop.eup %672  ;;  %v468_v43 = vmul.f32 0.6931472, %v671_v36  ;;  %674 = vlog2.f32 %v438_v40 }
 0x1b6   :  { %v481_v19 = vsub.f32 %v935_v26, %v452_v38  ;;  %v466_v20 = vmul.f32 0.6931472, %v673_v42  ;;  %676 = vlog2.f32 %v428_v41 }
 0x1b7   :  { %v489_v44 = vsub.f32 %v941_v31, %v468_v43 }
 0x1b8   :  { %497 = vst [vmem:[%s1041_s4 + $0x10] sm:$0xff] %v481_v19  ;;  %v488_v45 = vsub.f32 %v938_v29, %v466_v20 }
 0x1b9   :  { %505 = vst [vmem:[%s1041_s4 + $0x50] sm:$0xff] %v489_v44 }
 0x1ba   :  { %504 = vst [vmem:[%s1041_s4 + $0x48] sm:$0xff] %v488_v45 }
 0x1bb   :  { %v675_v47 = vpop.eup %674 }
 0x1bc   :  { %v677_v26 = vpop.eup %676  ;;  %v470_v48 = vmul.f32 0.6931472, %v675_v47  ;;  %v444_v50 = vpop.xlane.xlu0 %443 }
 0x1bd   :  { %v422_v51 = vpop.xlane.xlu1 %421  ;;  %v460_v31 = vmul.f32 0.6931472, %v677_v26  ;;  %678 = vlog2.f32 %v444_v50  ;;  %v430_v52 = vpop.xlane.xlu2 %429 }
 0x1be   :  { %v490_v53 = vsub.f32 %v946_v37, %v470_v48  ;;  %680 = vlog2.f32 %v430_v52 }
 0x1bf   :  { %v485_v29 = vsub.f32 %v949_v39, %v460_v31  ;;  %682 = vlog2.f32 %v422_v51 }
 0x1c0   :  { %506 = vst [vmem:[%s1041_s4 + $0x58] sm:$0xff] %v490_v53 }
 0x1c1   :  { %501 = vst [vmem:[%s1041_s4 + $0x30] sm:$0xff] %v485_v29 }
 0x1c3   :  { %v679_v55 = vpop.eup %678 }
 0x1c4   :  { %v681_v56 = vpop.eup %680  ;;  %v476_v58 = vmul.f32 0.6931472, %v679_v55 }
 0x1c5   :  { %v446_v59 = vpop.xlane.xlu1 %445  ;;  %v683_v60 = vpop.eup %682  ;;  %v462_v62 = vmul.f32 0.6931472, %v681_v56 }
 0x1c6   :  { %v442_v63 = vpop.xlane.xlu2 %441  ;;  %684 = vlog2.f32 %v446_v59  ;;  %v493_v37 = vsub.f32 %v958_v49, %v476_v58  ;;  %v454_v39 = vmul.f32 0.6931472, %v683_v60 }
 0x1c7   :  { %686 = vlog2.f32 %v442_v63  ;;  %v486_v1 = vsub.f32 %v962_v54, %v462_v62 }
 0x1c8   :  { %509 = vst [vmem:[%s1041_s4 + $0x70] sm:$0xff] %v493_v37  ;;  %v482_v3 = vsub.f32 %v954_v46, %v454_v39 }
 0x1c9   :  { %502 = vst [vmem:[%s1041_s4 + $0x38] sm:$0xff] %v486_v1 }
 0x1ca   :  { %498 = vst [vmem:[%s1041_s4 + $0x18] sm:$0xff] %v482_v3 }
 0x1cc   :  { %v685_v0 = vpop.eup %684 }
 0x1cd   :  { %v687_v49 = vpop.eup %686  ;;  %v478_v4 = vmul.f32 0.6931472, %v685_v0 }
 0x1ce   :  { %v474_v7 = vmul.f32 0.6931472, %v687_v49 }
 0x1cf   :  { %v494_v54 = vsub.f32 %v966_v57, %v478_v4 }
 0x1d0   :  { %v492_v8 = vsub.f32 %v970_v61, %v474_v7 }
 0x1d1   :  { %510 = vst [vmem:[%s1041_s4 + $0x78] sm:$0xff] %v494_v54 }
 0x1d2   :  { %508 = vst [vmem:[%s1041_s4 + $0x68] sm:$0xff] %v492_v8 }

</bundles_post_ra>
